<compile_context>
chip_gen: v5e
topology: v5e:2x2
jax: 0.10.0
libtpu: 0.0.40
codegen_flags: <defaults>
</compile_context>

<pallas_src>
import functools

import jax
import jax.numpy as jnp
from jax.experimental import pallas as pl
from jax.experimental.pallas import tpu as pltpu

_INV_SQRT2 = 0.7071067811865476


def _prenorm_ff_kernel(x_ref, w1g_ref, b1f_ref, w2t_ref, b2_ref, o_ref, *, eps):
    # x_ref/o_ref: (N*C, T)  batch packed along sublanes, tokens on lanes (lane-dense)
    # w1g_ref:     (hidden, C)  conv-1 weight^T with LN gamma folded in
    # b1f_ref:     (hidden, 1)  conv-1 bias with LN beta folded in
    # w2t_ref:     (C, hidden)  conv-2 weight^T
    # b2_ref:      (C, 1)       conv-2 bias
    C, hidden = w2t_ref.shape
    n_img = x_ref.shape[0] // C

    # Tiny weights: load once, reuse across the per-image unroll.
    w1g = w1g_ref[...]
    b1f = b1f_ref[...]
    w2t = w2t_ref[...]
    b2 = b2_ref[...]

    for g in range(n_img):                      # static unroll over packed images
        rows = pl.ds(g * C, C)
        xg = x_ref[rows, :].astype(jnp.float32)              # (C, T)

        # Per-pixel LayerNorm over channels: (x - mean) / (sqrt(var) + eps)
        mean = jnp.mean(xg, axis=0, keepdims=True)            # (1, T)
        xc = xg - mean
        var = jnp.mean(xc * xc, axis=0, keepdims=True)        # ddof = 0
        inv = 1.0 / (jnp.sqrt(var) + eps)                     # divide only the (1,T) row
        z = xc * inv                                          # gamma/beta folded into conv-1

        # conv-1 (1x1, K=C) as unrolled VPU broadcast-FMA (outer-product accumulate).
        h = w1g[:, 0:1] * z[0:1, :]
        for c in range(1, C):
            h = h + w1g[:, c:c + 1] * z[c:c + 1, :]
        h = h + b1f                                           # (hidden, T)

        # Exact erf GELU (torch default); dropout p=0 (eval) omitted.
        h = 0.5 * h * (1.0 + jax.lax.erf(h * _INV_SQRT2))

        # conv-2 (1x1, K=hidden) as unrolled broadcast-FMA.
        og = w2t[:, 0:1] * h[0:1, :]
        for d in range(1, hidden):
            og = og + w2t[:, d:d + 1] * h[d:d + 1, :]
        og = og + b2                                          # (C, T)

        o_ref[rows, :] = og.astype(o_ref.dtype)


@functools.partial(jax.jit, static_argnames=("tm_tok",))
def prenorm_feed_forward(x, g_ln, b_ln, w1, b1, w2, b2, *, tm_tok=2048):
    """x: (N, C, H, W) f32.  g_ln, b_ln: (C,).  w1: (C, hidden), b1: (hidden,),
    w2: (hidden, C), b2: (C,)."""
    N, C, H, W = x.shape
    hidden = w1.shape[1]
    HW = H * W
    eps = 1e-5

    assert tm_tok % 128 == 0, "token tile must be a multiple of 128 (lane width)"

    # Fold the LayerNorm affine into the first 1x1 conv (tiny wrapper-side math):
    #   W1^T (z*g + b) + b1  ==  (W1^T * g) z + (W1^T b + b1)
    w1t = w1.T                                   # (hidden, C)
    w1g = w1t * g_ln[None, :]                    # (hidden, C)
    b1f = (w1t @ b_ln + b1).reshape(hidden, 1)   # (hidden, 1)
    w2t = w2.T                                   # (C, hidden)
    b2c = b2.reshape(C, 1)

    # Pack the batch along the sublane axis: (N, C, HW) -> (N*C, HW) is a free
    # contiguous reshape (no transpose), keeping one HBM read + one HBM write of
    # the activations while collapsing the grid to token tiles only.
    xt = x.reshape(N * C, HW)

    # Token tile: lane-dense multiple of 128.  Keep >=2 grid steps when there is
    # enough work so v7x megacore can use both TensorCores; on v5e/v6e the extra
    # step costs only ~0.35 us.
    lanes = 128 * pl.cdiv(HW, 128)
    t = min(tm_tok, lanes)
    if lanes // t < 2 and lanes >= 256:
        t = max(128, ((lanes // 2) // 128) * 128)
    HW_pad = t * pl.cdiv(HW, t)
    if HW_pad != HW:
        # TODO(synk): for production ragged HW, mask the tail tile in-kernel instead of
        # materializing a padded copy of the activations in HBM.
        xt = jnp.pad(xt, ((0, 0), (0, HW_pad - HW)))

    grid = (HW_pad // t,)

    M_tok = N * HW
    cost = pl.CostEstimate(
        flops=int(4 * M_tok * C * hidden + 10 * M_tok * (C + hidden)),
        transcendentals=int(M_tok * hidden),
        bytes_accessed=int(4 * (2 * M_tok * C + 2 * C * hidden + hidden + 2 * C)),
    )

    out = pl.pallas_call(
        functools.partial(_prenorm_ff_kernel, eps=eps),
        out_shape=jax.ShapeDtypeStruct((N * C, HW_pad), x.dtype),
        grid_spec=pltpu.PrefetchScalarGridSpec(
            num_scalar_prefetch=0,
            grid=grid,
            in_specs=[
                pl.BlockSpec((N * C, t), lambda i: (0, i)),     # packed activations
                pl.BlockSpec((hidden, C), lambda i: (0, 0)),    # W1^T * gamma (resident)
                pl.BlockSpec((hidden, 1), lambda i: (0, 0)),    # folded conv-1 bias
                pl.BlockSpec((C, hidden), lambda i: (0, 0)),    # W2^T (resident)
                pl.BlockSpec((C, 1), lambda i: (0, 0)),         # conv-2 bias
            ],
            out_specs=pl.BlockSpec((N * C, t), lambda i: (0, i)),
        ),
        compiler_params=pltpu.CompilerParams(
            dimension_semantics=("parallel",)),
        cost_estimate=cost,
    )(xt, w1g, b1f, w2t, b2c)

    if HW_pad != HW:
        out = out[:, :HW]
    return out.reshape(N, C, H, W)


def _reference(x, g_ln, b_ln, w1, b1, w2, b2, eps=1e-5):
    # pure-JAX reference: PreNorm(LayerNorm over channels) -> FeedForward (1x1 convs)
    mean = jnp.mean(x, axis=1, keepdims=True)
    var = jnp.var(x, axis=1, keepdims=True)                  # unbiased=False
    xn = (x - mean) / (jnp.sqrt(var) + eps)
    xn = xn * g_ln[None, :, None, None] + b_ln[None, :, None, None]
    h = jnp.einsum("nchw,cd->ndhw", xn, w1) + b1[None, :, None, None]
    h = 0.5 * h * (1.0 + jax.lax.erf(h / jnp.sqrt(2.0)))
    o = jnp.einsum("ndhw,dc->nchw", h, w2) + b2[None, :, None, None]
    return o


if __name__ == "__main__":
    # Module config: dim=4, fn=FeedForward(dim, mult=4) -> hidden=16. Input (2, 4, 16, 16).
    dim, mult = 4, 4
    hidden = dim * mult
    N, H, W = 2, 16, 16

    key = jax.random.PRNGKey(0)
    kx, k1, k2, k3, k4, k5, k6 = jax.random.split(key, 7)

    x = jax.random.normal(kx, (N, dim, H, W), dtype=jnp.float32)
    # LayerNorm params (torch init is g=1, b=0; perturb so they are exercised).
    g_ln = 1.0 + 0.1 * jax.random.normal(k5, (dim,), dtype=jnp.float32)
    b_ln = 0.1 * jax.random.normal(k6, (dim,), dtype=jnp.float32)
    # Conv2d(dim, hidden, 1) weight is (hidden, dim, 1, 1); stored transposed as (dim, hidden).
    w1 = jax.random.normal(k1, (dim, hidden), dtype=jnp.float32) * 0.1
    b1 = jax.random.normal(k2, (hidden,), dtype=jnp.float32) * 0.1
    w2 = jax.random.normal(k3, (hidden, dim), dtype=jnp.float32) * 0.1
    b2 = jax.random.normal(k4, (dim,), dtype=jnp.float32) * 0.1

    out = prenorm_feed_forward(x, g_ln, b_ln, w1, b1, w2, b2)
    out = jax.block_until_ready(out)

    ref = _reference(x, g_ln, b_ln, w1, b1, w2, b2)
    assert out.shape == (N, dim, H, W), out.shape
    err = float(jnp.max(jnp.abs(out - ref)))
    assert jnp.allclose(out, ref, atol=1e-5, rtol=1e-5), err

    print("KERNEL_OK")
</pallas_src>

<mosaic_0001>
module attributes {stable_mosaic.version = 11 : i64} {
  func.func @_prenorm_ff_kernel(%arg0: i32, %arg1: memref<8x128xf32, #tpu.memory_space<vmem>>, %arg2: memref<16x4xf32, #tpu.memory_space<vmem>>, %arg3: memref<16x1xf32, #tpu.memory_space<vmem>>, %arg4: memref<4x16xf32, #tpu.memory_space<vmem>>, %arg5: memref<4x1xf32, #tpu.memory_space<vmem>>, %arg6: memref<8x128xf32, #tpu.memory_space<vmem>>) attributes {dimension_semantics = [#tpu.dimension_semantics<parallel>], iteration_bounds = array<i64: 2>, scalar_prefetch = 0 : i64, scratch_operands = 0 : i64, tpu.core_type = #tpu.core_type<tc>, window_params = [{transform_indices = @transform_0, window_bounds = array<i64: 8, 128>}, {pipeline_mode = #tpu.pipeline_mode<synchronous>, transform_indices = @transform_1, window_bounds = array<i64: 16, 4>}, {pipeline_mode = #tpu.pipeline_mode<synchronous>, transform_indices = @transform_2, window_bounds = array<i64: 16, 1>}, {pipeline_mode = #tpu.pipeline_mode<synchronous>, transform_indices = @transform_3, window_bounds = array<i64: 4, 16>}, {pipeline_mode = #tpu.pipeline_mode<synchronous>, transform_indices = @transform_4, window_bounds = array<i64: 4, 1>}, {transform_indices = @transform_5, window_bounds = array<i64: 8, 128>}]} {
    %c0 = arith.constant 0 : index
    %c0_0 = arith.constant 0 : index
    %0 = vector.load %arg2[%c0, %c0_0] : memref<16x4xf32, #tpu.memory_space<vmem>>, vector<16x4xf32>
    %c0_1 = arith.constant 0 : index
    %c0_2 = arith.constant 0 : index
    %1 = vector.load %arg3[%c0_1, %c0_2] : memref<16x1xf32, #tpu.memory_space<vmem>>, vector<16x1xf32>
    %c0_3 = arith.constant 0 : index
    %c0_4 = arith.constant 0 : index
    %2 = vector.load %arg4[%c0_3, %c0_4] : memref<4x16xf32, #tpu.memory_space<vmem>>, vector<4x16xf32>
    %c0_5 = arith.constant 0 : index
    %c0_6 = arith.constant 0 : index
    %3 = vector.load %arg5[%c0_5, %c0_6] : memref<4x1xf32, #tpu.memory_space<vmem>>, vector<4x1xf32>
    %c0_7 = arith.constant 0 : index
    %c0_8 = arith.constant 0 : index
    %4 = vector.load %arg1[%c0_7, %c0_8] : memref<8x128xf32, #tpu.memory_space<vmem>>, vector<4x128xf32>
    %cst = arith.constant dense<0.000000e+00> : vector<128xf32>
    %5 = vector.multi_reduction <add>, %4, %cst [0] : vector<4x128xf32> to vector<128xf32>
    %6 = vector.shape_cast %5 : vector<128xf32> to vector<1x128xf32>
    %cst_9 = arith.constant 4.000000e+00 : f32
    %7 = vector.broadcast %cst_9 : f32 to vector<1x128xf32>
    %8 = arith.divf %6, %7 : vector<1x128xf32>
    %9 = vector.broadcast %8 : vector<1x128xf32> to vector<4x128xf32>
    %10 = arith.subf %4, %9 : vector<4x128xf32>
    %11 = arith.mulf %10, %10 : vector<4x128xf32>
    %cst_10 = arith.constant dense<0.000000e+00> : vector<128xf32>
    %12 = vector.multi_reduction <add>, %11, %cst_10 [0] : vector<4x128xf32> to vector<128xf32>
    %13 = vector.shape_cast %12 : vector<128xf32> to vector<1x128xf32>
    %cst_11 = arith.constant 4.000000e+00 : f32
    %14 = vector.broadcast %cst_11 : f32 to vector<1x128xf32>
    %15 = arith.divf %13, %14 : vector<1x128xf32>
    %16 = math.sqrt %15 : vector<1x128xf32>
    %cst_12 = arith.constant 9.99999974E-6 : f32
    %17 = vector.broadcast %cst_12 : f32 to vector<1x128xf32>
    %18 = arith.addf %16, %17 : vector<1x128xf32>
    %cst_13 = arith.constant 1.000000e+00 : f32
    %19 = vector.broadcast %cst_13 : f32 to vector<1x128xf32>
    %20 = arith.divf %19, %18 : vector<1x128xf32>
    %21 = vector.broadcast %20 : vector<1x128xf32> to vector<4x128xf32>
    %22 = arith.mulf %10, %21 : vector<4x128xf32>
    %23 = vector.extract_strided_slice %0 {offsets = [0, 0], sizes = [16, 1], strides = [1, 1]} : vector<16x4xf32> to vector<16x1xf32>
    %24 = vector.extract_strided_slice %22 {offsets = [0, 0], sizes = [1, 128], strides = [1, 1]} : vector<4x128xf32> to vector<1x128xf32>
    %25 = vector.broadcast %23 : vector<16x1xf32> to vector<16x128xf32>
    %26 = vector.broadcast %24 : vector<1x128xf32> to vector<16x128xf32>
    %27 = arith.mulf %25, %26 : vector<16x128xf32>
    %28 = vector.extract_strided_slice %0 {offsets = [0, 1], sizes = [16, 1], strides = [1, 1]} : vector<16x4xf32> to vector<16x1xf32>
    %29 = vector.extract_strided_slice %22 {offsets = [1, 0], sizes = [1, 128], strides = [1, 1]} : vector<4x128xf32> to vector<1x128xf32>
    %30 = vector.broadcast %28 : vector<16x1xf32> to vector<16x128xf32>
    %31 = vector.broadcast %29 : vector<1x128xf32> to vector<16x128xf32>
    %32 = arith.mulf %30, %31 : vector<16x128xf32>
    %33 = arith.addf %27, %32 : vector<16x128xf32>
    %34 = vector.extract_strided_slice %0 {offsets = [0, 2], sizes = [16, 1], strides = [1, 1]} : vector<16x4xf32> to vector<16x1xf32>
    %35 = vector.extract_strided_slice %22 {offsets = [2, 0], sizes = [1, 128], strides = [1, 1]} : vector<4x128xf32> to vector<1x128xf32>
    %36 = vector.broadcast %34 : vector<16x1xf32> to vector<16x128xf32>
    %37 = vector.broadcast %35 : vector<1x128xf32> to vector<16x128xf32>
    %38 = arith.mulf %36, %37 : vector<16x128xf32>
    %39 = arith.addf %33, %38 : vector<16x128xf32>
    %40 = vector.extract_strided_slice %0 {offsets = [0, 3], sizes = [16, 1], strides = [1, 1]} : vector<16x4xf32> to vector<16x1xf32>
    %41 = vector.extract_strided_slice %22 {offsets = [3, 0], sizes = [1, 128], strides = [1, 1]} : vector<4x128xf32> to vector<1x128xf32>
    %42 = vector.broadcast %40 : vector<16x1xf32> to vector<16x128xf32>
    %43 = vector.broadcast %41 : vector<1x128xf32> to vector<16x128xf32>
    %44 = arith.mulf %42, %43 : vector<16x128xf32>
    %45 = arith.addf %39, %44 : vector<16x128xf32>
    %46 = vector.broadcast %1 : vector<16x1xf32> to vector<16x128xf32>
    %47 = arith.addf %45, %46 : vector<16x128xf32>
    %cst_14 = arith.constant 5.000000e-01 : f32
    %48 = vector.broadcast %cst_14 : f32 to vector<16x128xf32>
    %49 = arith.mulf %48, %47 : vector<16x128xf32>
    %cst_15 = arith.constant 0.707106769 : f32
    %50 = vector.broadcast %cst_15 : f32 to vector<16x128xf32>
    %51 = arith.mulf %47, %50 : vector<16x128xf32>
    %52 = math.erf %51 : vector<16x128xf32>
    %cst_16 = arith.constant 1.000000e+00 : f32
    %53 = vector.broadcast %cst_16 : f32 to vector<16x128xf32>
    %54 = arith.addf %53, %52 : vector<16x128xf32>
    %55 = arith.mulf %49, %54 : vector<16x128xf32>
    %56 = vector.extract_strided_slice %2 {offsets = [0, 0], sizes = [4, 1], strides = [1, 1]} : vector<4x16xf32> to vector<4x1xf32>
    %57 = vector.extract_strided_slice %55 {offsets = [0, 0], sizes = [1, 128], strides = [1, 1]} : vector<16x128xf32> to vector<1x128xf32>
    %58 = vector.broadcast %56 : vector<4x1xf32> to vector<4x128xf32>
    %59 = vector.broadcast %57 : vector<1x128xf32> to vector<4x128xf32>
    %60 = arith.mulf %58, %59 : vector<4x128xf32>
    %61 = vector.extract_strided_slice %2 {offsets = [0, 1], sizes = [4, 1], strides = [1, 1]} : vector<4x16xf32> to vector<4x1xf32>
    %62 = vector.extract_strided_slice %55 {offsets = [1, 0], sizes = [1, 128], strides = [1, 1]} : vector<16x128xf32> to vector<1x128xf32>
    %63 = vector.broadcast %61 : vector<4x1xf32> to vector<4x128xf32>
    %64 = vector.broadcast %62 : vector<1x128xf32> to vector<4x128xf32>
    %65 = arith.mulf %63, %64 : vector<4x128xf32>
    %66 = arith.addf %60, %65 : vector<4x128xf32>
    %67 = vector.extract_strided_slice %2 {offsets = [0, 2], sizes = [4, 1], strides = [1, 1]} : vector<4x16xf32> to vector<4x1xf32>
    %68 = vector.extract_strided_slice %55 {offsets = [2, 0], sizes = [1, 128], strides = [1, 1]} : vector<16x128xf32> to vector<1x128xf32>
    %69 = vector.broadcast %67 : vector<4x1xf32> to vector<4x128xf32>
    %70 = vector.broadcast %68 : vector<1x128xf32> to vector<4x128xf32>
    %71 = arith.mulf %69, %70 : vector<4x128xf32>
    %72 = arith.addf %66, %71 : vector<4x128xf32>
    %73 = vector.extract_strided_slice %2 {offsets = [0, 3], sizes = [4, 1], strides = [1, 1]} : vector<4x16xf32> to vector<4x1xf32>
    %74 = vector.extract_strided_slice %55 {offsets = [3, 0], sizes = [1, 128], strides = [1, 1]} : vector<16x128xf32> to vector<1x128xf32>
    %75 = vector.broadcast %73 : vector<4x1xf32> to vector<4x128xf32>
    %76 = vector.broadcast %74 : vector<1x128xf32> to vector<4x128xf32>
    %77 = arith.mulf %75, %76 : vector<4x128xf32>
    %78 = arith.addf %72, %77 : vector<4x128xf32>
    %79 = vector.extract_strided_slice %2 {offsets = [0, 4], sizes = [4, 1], strides = [1, 1]} : vector<4x16xf32> to vector<4x1xf32>
    %80 = vector.extract_strided_slice %55 {offsets = [4, 0], sizes = [1, 128], strides = [1, 1]} : vector<16x128xf32> to vector<1x128xf32>
    %81 = vector.broadcast %79 : vector<4x1xf32> to vector<4x128xf32>
    %82 = vector.broadcast %80 : vector<1x128xf32> to vector<4x128xf32>
    %83 = arith.mulf %81, %82 : vector<4x128xf32>
    %84 = arith.addf %78, %83 : vector<4x128xf32>
    %85 = vector.extract_strided_slice %2 {offsets = [0, 5], sizes = [4, 1], strides = [1, 1]} : vector<4x16xf32> to vector<4x1xf32>
    %86 = vector.extract_strided_slice %55 {offsets = [5, 0], sizes = [1, 128], strides = [1, 1]} : vector<16x128xf32> to vector<1x128xf32>
    %87 = vector.broadcast %85 : vector<4x1xf32> to vector<4x128xf32>
    %88 = vector.broadcast %86 : vector<1x128xf32> to vector<4x128xf32>
    %89 = arith.mulf %87, %88 : vector<4x128xf32>
    %90 = arith.addf %84, %89 : vector<4x128xf32>
    %91 = vector.extract_strided_slice %2 {offsets = [0, 6], sizes = [4, 1], strides = [1, 1]} : vector<4x16xf32> to vector<4x1xf32>
    %92 = vector.extract_strided_slice %55 {offsets = [6, 0], sizes = [1, 128], strides = [1, 1]} : vector<16x128xf32> to vector<1x128xf32>
    %93 = vector.broadcast %91 : vector<4x1xf32> to vector<4x128xf32>
    %94 = vector.broadcast %92 : vector<1x128xf32> to vector<4x128xf32>
    %95 = arith.mulf %93, %94 : vector<4x128xf32>
    %96 = arith.addf %90, %95 : vector<4x128xf32>
    %97 = vector.extract_strided_slice %2 {offsets = [0, 7], sizes = [4, 1], strides = [1, 1]} : vector<4x16xf32> to vector<4x1xf32>
    %98 = vector.extract_strided_slice %55 {offsets = [7, 0], sizes = [1, 128], strides = [1, 1]} : vector<16x128xf32> to vector<1x128xf32>
    %99 = vector.broadcast %97 : vector<4x1xf32> to vector<4x128xf32>
    %100 = vector.broadcast %98 : vector<1x128xf32> to vector<4x128xf32>
    %101 = arith.mulf %99, %100 : vector<4x128xf32>
    %102 = arith.addf %96, %101 : vector<4x128xf32>
    %103 = vector.extract_strided_slice %2 {offsets = [0, 8], sizes = [4, 1], strides = [1, 1]} : vector<4x16xf32> to vector<4x1xf32>
    %104 = vector.extract_strided_slice %55 {offsets = [8, 0], sizes = [1, 128], strides = [1, 1]} : vector<16x128xf32> to vector<1x128xf32>
    %105 = vector.broadcast %103 : vector<4x1xf32> to vector<4x128xf32>
    %106 = vector.broadcast %104 : vector<1x128xf32> to vector<4x128xf32>
    %107 = arith.mulf %105, %106 : vector<4x128xf32>
    %108 = arith.addf %102, %107 : vector<4x128xf32>
    %109 = vector.extract_strided_slice %2 {offsets = [0, 9], sizes = [4, 1], strides = [1, 1]} : vector<4x16xf32> to vector<4x1xf32>
    %110 = vector.extract_strided_slice %55 {offsets = [9, 0], sizes = [1, 128], strides = [1, 1]} : vector<16x128xf32> to vector<1x128xf32>
    %111 = vector.broadcast %109 : vector<4x1xf32> to vector<4x128xf32>
    %112 = vector.broadcast %110 : vector<1x128xf32> to vector<4x128xf32>
    %113 = arith.mulf %111, %112 : vector<4x128xf32>
    %114 = arith.addf %108, %113 : vector<4x128xf32>
    %115 = vector.extract_strided_slice %2 {offsets = [0, 10], sizes = [4, 1], strides = [1, 1]} : vector<4x16xf32> to vector<4x1xf32>
    %116 = vector.extract_strided_slice %55 {offsets = [10, 0], sizes = [1, 128], strides = [1, 1]} : vector<16x128xf32> to vector<1x128xf32>
    %117 = vector.broadcast %115 : vector<4x1xf32> to vector<4x128xf32>
    %118 = vector.broadcast %116 : vector<1x128xf32> to vector<4x128xf32>
    %119 = arith.mulf %117, %118 : vector<4x128xf32>
    %120 = arith.addf %114, %119 : vector<4x128xf32>
    %121 = vector.extract_strided_slice %2 {offsets = [0, 11], sizes = [4, 1], strides = [1, 1]} : vector<4x16xf32> to vector<4x1xf32>
    %122 = vector.extract_strided_slice %55 {offsets = [11, 0], sizes = [1, 128], strides = [1, 1]} : vector<16x128xf32> to vector<1x128xf32>
    %123 = vector.broadcast %121 : vector<4x1xf32> to vector<4x128xf32>
    %124 = vector.broadcast %122 : vector<1x128xf32> to vector<4x128xf32>
    %125 = arith.mulf %123, %124 : vector<4x128xf32>
    %126 = arith.addf %120, %125 : vector<4x128xf32>
    %127 = vector.extract_strided_slice %2 {offsets = [0, 12], sizes = [4, 1], strides = [1, 1]} : vector<4x16xf32> to vector<4x1xf32>
    %128 = vector.extract_strided_slice %55 {offsets = [12, 0], sizes = [1, 128], strides = [1, 1]} : vector<16x128xf32> to vector<1x128xf32>
    %129 = vector.broadcast %127 : vector<4x1xf32> to vector<4x128xf32>
    %130 = vector.broadcast %128 : vector<1x128xf32> to vector<4x128xf32>
    %131 = arith.mulf %129, %130 : vector<4x128xf32>
    %132 = arith.addf %126, %131 : vector<4x128xf32>
    %133 = vector.extract_strided_slice %2 {offsets = [0, 13], sizes = [4, 1], strides = [1, 1]} : vector<4x16xf32> to vector<4x1xf32>
    %134 = vector.extract_strided_slice %55 {offsets = [13, 0], sizes = [1, 128], strides = [1, 1]} : vector<16x128xf32> to vector<1x128xf32>
    %135 = vector.broadcast %133 : vector<4x1xf32> to vector<4x128xf32>
    %136 = vector.broadcast %134 : vector<1x128xf32> to vector<4x128xf32>
    %137 = arith.mulf %135, %136 : vector<4x128xf32>
    %138 = arith.addf %132, %137 : vector<4x128xf32>
    %139 = vector.extract_strided_slice %2 {offsets = [0, 14], sizes = [4, 1], strides = [1, 1]} : vector<4x16xf32> to vector<4x1xf32>
    %140 = vector.extract_strided_slice %55 {offsets = [14, 0], sizes = [1, 128], strides = [1, 1]} : vector<16x128xf32> to vector<1x128xf32>
    %141 = vector.broadcast %139 : vector<4x1xf32> to vector<4x128xf32>
    %142 = vector.broadcast %140 : vector<1x128xf32> to vector<4x128xf32>
    %143 = arith.mulf %141, %142 : vector<4x128xf32>
    %144 = arith.addf %138, %143 : vector<4x128xf32>
    %145 = vector.extract_strided_slice %2 {offsets = [0, 15], sizes = [4, 1], strides = [1, 1]} : vector<4x16xf32> to vector<4x1xf32>
    %146 = vector.extract_strided_slice %55 {offsets = [15, 0], sizes = [1, 128], strides = [1, 1]} : vector<16x128xf32> to vector<1x128xf32>
    %147 = vector.broadcast %145 : vector<4x1xf32> to vector<4x128xf32>
    %148 = vector.broadcast %146 : vector<1x128xf32> to vector<4x128xf32>
    %149 = arith.mulf %147, %148 : vector<4x128xf32>
    %150 = arith.addf %144, %149 : vector<4x128xf32>
    %151 = vector.broadcast %3 : vector<4x1xf32> to vector<4x128xf32>
    %152 = arith.addf %150, %151 : vector<4x128xf32>
    %c0_17 = arith.constant 0 : index
    %c0_18 = arith.constant 0 : index
    %153 = vector.load %arg6[%c0_17, %c0_18] : memref<8x128xf32, #tpu.memory_space<vmem>>, vector<4x128xf32>
    tpu.vector_store %arg6[%c0_17, %c0_18], %152 {strides = array<i32>} : memref<8x128xf32, #tpu.memory_space<vmem>>, vector<4x128xf32>,
    %c4 = arith.constant 4 : index
    %c0_19 = arith.constant 0 : index
    %154 = vector.load %arg1[%c4, %c0_19] : memref<8x128xf32, #tpu.memory_space<vmem>>, vector<4x128xf32>
    %cst_20 = arith.constant dense<0.000000e+00> : vector<128xf32>
    %155 = vector.multi_reduction <add>, %154, %cst_20 [0] : vector<4x128xf32> to vector<128xf32>
    %156 = vector.shape_cast %155 : vector<128xf32> to vector<1x128xf32>
    %cst_21 = arith.constant 4.000000e+00 : f32
    %157 = vector.broadcast %cst_21 : f32 to vector<1x128xf32>
    %158 = arith.divf %156, %157 : vector<1x128xf32>
    %159 = vector.broadcast %158 : vector<1x128xf32> to vector<4x128xf32>
    %160 = arith.subf %154, %159 : vector<4x128xf32>
    %161 = arith.mulf %160, %160 : vector<4x128xf32>
    %cst_22 = arith.constant dense<0.000000e+00> : vector<128xf32>
    %162 = vector.multi_reduction <add>, %161, %cst_22 [0] : vector<4x128xf32> to vector<128xf32>
    %163 = vector.shape_cast %162 : vector<128xf32> to vector<1x128xf32>
    %cst_23 = arith.constant 4.000000e+00 : f32
    %164 = vector.broadcast %cst_23 : f32 to vector<1x128xf32>
    %165 = arith.divf %163, %164 : vector<1x128xf32>
    %166 = math.sqrt %165 : vector<1x128xf32>
    %cst_24 = arith.constant 9.99999974E-6 : f32
    %167 = vector.broadcast %cst_24 : f32 to vector<1x128xf32>
    %168 = arith.addf %166, %167 : vector<1x128xf32>
    %cst_25 = arith.constant 1.000000e+00 : f32
    %169 = vector.broadcast %cst_25 : f32 to vector<1x128xf32>
    %170 = arith.divf %169, %168 : vector<1x128xf32>
    %171 = vector.broadcast %170 : vector<1x128xf32> to vector<4x128xf32>
    %172 = arith.mulf %160, %171 : vector<4x128xf32>
    %173 = vector.extract_strided_slice %0 {offsets = [0, 0], sizes = [16, 1], strides = [1, 1]} : vector<16x4xf32> to vector<16x1xf32>
    %174 = vector.extract_strided_slice %172 {offsets = [0, 0], sizes = [1, 128], strides = [1, 1]} : vector<4x128xf32> to vector<1x128xf32>
    %175 = vector.broadcast %173 : vector<16x1xf32> to vector<16x128xf32>
    %176 = vector.broadcast %174 : vector<1x128xf32> to vector<16x128xf32>
    %177 = arith.mulf %175, %176 : vector<16x128xf32>
    %178 = vector.extract_strided_slice %0 {offsets = [0, 1], sizes = [16, 1], strides = [1, 1]} : vector<16x4xf32> to vector<16x1xf32>
    %179 = vector.extract_strided_slice %172 {offsets = [1, 0], sizes = [1, 128], strides = [1, 1]} : vector<4x128xf32> to vector<1x128xf32>
    %180 = vector.broadcast %178 : vector<16x1xf32> to vector<16x128xf32>
    %181 = vector.broadcast %179 : vector<1x128xf32> to vector<16x128xf32>
    %182 = arith.mulf %180, %181 : vector<16x128xf32>
    %183 = arith.addf %177, %182 : vector<16x128xf32>
    %184 = vector.extract_strided_slice %0 {offsets = [0, 2], sizes = [16, 1], strides = [1, 1]} : vector<16x4xf32> to vector<16x1xf32>
    %185 = vector.extract_strided_slice %172 {offsets = [2, 0], sizes = [1, 128], strides = [1, 1]} : vector<4x128xf32> to vector<1x128xf32>
    %186 = vector.broadcast %184 : vector<16x1xf32> to vector<16x128xf32>
    %187 = vector.broadcast %185 : vector<1x128xf32> to vector<16x128xf32>
    %188 = arith.mulf %186, %187 : vector<16x128xf32>
    %189 = arith.addf %183, %188 : vector<16x128xf32>
    %190 = vector.extract_strided_slice %0 {offsets = [0, 3], sizes = [16, 1], strides = [1, 1]} : vector<16x4xf32> to vector<16x1xf32>
    %191 = vector.extract_strided_slice %172 {offsets = [3, 0], sizes = [1, 128], strides = [1, 1]} : vector<4x128xf32> to vector<1x128xf32>
    %192 = vector.broadcast %190 : vector<16x1xf32> to vector<16x128xf32>
    %193 = vector.broadcast %191 : vector<1x128xf32> to vector<16x128xf32>
    %194 = arith.mulf %192, %193 : vector<16x128xf32>
    %195 = arith.addf %189, %194 : vector<16x128xf32>
    %196 = vector.broadcast %1 : vector<16x1xf32> to vector<16x128xf32>
    %197 = arith.addf %195, %196 : vector<16x128xf32>
    %cst_26 = arith.constant 5.000000e-01 : f32
    %198 = vector.broadcast %cst_26 : f32 to vector<16x128xf32>
    %199 = arith.mulf %198, %197 : vector<16x128xf32>
    %cst_27 = arith.constant 0.707106769 : f32
    %200 = vector.broadcast %cst_27 : f32 to vector<16x128xf32>
    %201 = arith.mulf %197, %200 : vector<16x128xf32>
    %202 = math.erf %201 : vector<16x128xf32>
    %cst_28 = arith.constant 1.000000e+00 : f32
    %203 = vector.broadcast %cst_28 : f32 to vector<16x128xf32>
    %204 = arith.addf %203, %202 : vector<16x128xf32>
    %205 = arith.mulf %199, %204 : vector<16x128xf32>
    %206 = vector.extract_strided_slice %2 {offsets = [0, 0], sizes = [4, 1], strides = [1, 1]} : vector<4x16xf32> to vector<4x1xf32>
    %207 = vector.extract_strided_slice %205 {offsets = [0, 0], sizes = [1, 128], strides = [1, 1]} : vector<16x128xf32> to vector<1x128xf32>
    %208 = vector.broadcast %206 : vector<4x1xf32> to vector<4x128xf32>
    %209 = vector.broadcast %207 : vector<1x128xf32> to vector<4x128xf32>
    %210 = arith.mulf %208, %209 : vector<4x128xf32>
    %211 = vector.extract_strided_slice %2 {offsets = [0, 1], sizes = [4, 1], strides = [1, 1]} : vector<4x16xf32> to vector<4x1xf32>
    %212 = vector.extract_strided_slice %205 {offsets = [1, 0], sizes = [1, 128], strides = [1, 1]} : vector<16x128xf32> to vector<1x128xf32>
    %213 = vector.broadcast %211 : vector<4x1xf32> to vector<4x128xf32>
    %214 = vector.broadcast %212 : vector<1x128xf32> to vector<4x128xf32>
    %215 = arith.mulf %213, %214 : vector<4x128xf32>
    %216 = arith.addf %210, %215 : vector<4x128xf32>
    %217 = vector.extract_strided_slice %2 {offsets = [0, 2], sizes = [4, 1], strides = [1, 1]} : vector<4x16xf32> to vector<4x1xf32>
    %218 = vector.extract_strided_slice %205 {offsets = [2, 0], sizes = [1, 128], strides = [1, 1]} : vector<16x128xf32> to vector<1x128xf32>
    %219 = vector.broadcast %217 : vector<4x1xf32> to vector<4x128xf32>
    %220 = vector.broadcast %218 : vector<1x128xf32> to vector<4x128xf32>
    %221 = arith.mulf %219, %220 : vector<4x128xf32>
    %222 = arith.addf %216, %221 : vector<4x128xf32>
    %223 = vector.extract_strided_slice %2 {offsets = [0, 3], sizes = [4, 1], strides = [1, 1]} : vector<4x16xf32> to vector<4x1xf32>
    %224 = vector.extract_strided_slice %205 {offsets = [3, 0], sizes = [1, 128], strides = [1, 1]} : vector<16x128xf32> to vector<1x128xf32>
    %225 = vector.broadcast %223 : vector<4x1xf32> to vector<4x128xf32>
    %226 = vector.broadcast %224 : vector<1x128xf32> to vector<4x128xf32>
    %227 = arith.mulf %225, %226 : vector<4x128xf32>
    %228 = arith.addf %222, %227 : vector<4x128xf32>
    %229 = vector.extract_strided_slice %2 {offsets = [0, 4], sizes = [4, 1], strides = [1, 1]} : vector<4x16xf32> to vector<4x1xf32>
    %230 = vector.extract_strided_slice %205 {offsets = [4, 0], sizes = [1, 128], strides = [1, 1]} : vector<16x128xf32> to vector<1x128xf32>
    %231 = vector.broadcast %229 : vector<4x1xf32> to vector<4x128xf32>
    %232 = vector.broadcast %230 : vector<1x128xf32> to vector<4x128xf32>
    %233 = arith.mulf %231, %232 : vector<4x128xf32>
    %234 = arith.addf %228, %233 : vector<4x128xf32>
    %235 = vector.extract_strided_slice %2 {offsets = [0, 5], sizes = [4, 1], strides = [1, 1]} : vector<4x16xf32> to vector<4x1xf32>
    %236 = vector.extract_strided_slice %205 {offsets = [5, 0], sizes = [1, 128], strides = [1, 1]} : vector<16x128xf32> to vector<1x128xf32>
    %237 = vector.broadcast %235 : vector<4x1xf32> to vector<4x128xf32>
    %238 = vector.broadcast %236 : vector<1x128xf32> to vector<4x128xf32>
    %239 = arith.mulf %237, %238 : vector<4x128xf32>
    %240 = arith.addf %234, %239 : vector<4x128xf32>
    %241 = vector.extract_strided_slice %2 {offsets = [0, 6], sizes = [4, 1], strides = [1, 1]} : vector<4x16xf32> to vector<4x1xf32>
    %242 = vector.extract_strided_slice %205 {offsets = [6, 0], sizes = [1, 128], strides = [1, 1]} : vector<16x128xf32> to vector<1x128xf32>
    %243 = vector.broadcast %241 : vector<4x1xf32> to vector<4x128xf32>
    %244 = vector.broadcast %242 : vector<1x128xf32> to vector<4x128xf32>
    %245 = arith.mulf %243, %244 : vector<4x128xf32>
    %246 = arith.addf %240, %245 : vector<4x128xf32>
    %247 = vector.extract_strided_slice %2 {offsets = [0, 7], sizes = [4, 1], strides = [1, 1]} : vector<4x16xf32> to vector<4x1xf32>
    %248 = vector.extract_strided_slice %205 {offsets = [7, 0], sizes = [1, 128], strides = [1, 1]} : vector<16x128xf32> to vector<1x128xf32>
    %249 = vector.broadcast %247 : vector<4x1xf32> to vector<4x128xf32>
    %250 = vector.broadcast %248 : vector<1x128xf32> to vector<4x128xf32>
    %251 = arith.mulf %249, %250 : vector<4x128xf32>
    %252 = arith.addf %246, %251 : vector<4x128xf32>
    %253 = vector.extract_strided_slice %2 {offsets = [0, 8], sizes = [4, 1], strides = [1, 1]} : vector<4x16xf32> to vector<4x1xf32>
    %254 = vector.extract_strided_slice %205 {offsets = [8, 0], sizes = [1, 128], strides = [1, 1]} : vector<16x128xf32> to vector<1x128xf32>
    %255 = vector.broadcast %253 : vector<4x1xf32> to vector<4x128xf32>
    %256 = vector.broadcast %254 : vector<1x128xf32> to vector<4x128xf32>
    %257 = arith.mulf %255, %256 : vector<4x128xf32>
    %258 = arith.addf %252, %257 : vector<4x128xf32>
    %259 = vector.extract_strided_slice %2 {offsets = [0, 9], sizes = [4, 1], strides = [1, 1]} : vector<4x16xf32> to vector<4x1xf32>
    %260 = vector.extract_strided_slice %205 {offsets = [9, 0], sizes = [1, 128], strides = [1, 1]} : vector<16x128xf32> to vector<1x128xf32>
    %261 = vector.broadcast %259 : vector<4x1xf32> to vector<4x128xf32>
    %262 = vector.broadcast %260 : vector<1x128xf32> to vector<4x128xf32>
    %263 = arith.mulf %261, %262 : vector<4x128xf32>
    %264 = arith.addf %258, %263 : vector<4x128xf32>
    %265 = vector.extract_strided_slice %2 {offsets = [0, 10], sizes = [4, 1], strides = [1, 1]} : vector<4x16xf32> to vector<4x1xf32>
    %266 = vector.extract_strided_slice %205 {offsets = [10, 0], sizes = [1, 128], strides = [1, 1]} : vector<16x128xf32> to vector<1x128xf32>
    %267 = vector.broadcast %265 : vector<4x1xf32> to vector<4x128xf32>
    %268 = vector.broadcast %266 : vector<1x128xf32> to vector<4x128xf32>
    %269 = arith.mulf %267, %268 : vector<4x128xf32>
    %270 = arith.addf %264, %269 : vector<4x128xf32>
    %271 = vector.extract_strided_slice %2 {offsets = [0, 11], sizes = [4, 1], strides = [1, 1]} : vector<4x16xf32> to vector<4x1xf32>
    %272 = vector.extract_strided_slice %205 {offsets = [11, 0], sizes = [1, 128], strides = [1, 1]} : vector<16x128xf32> to vector<1x128xf32>
    %273 = vector.broadcast %271 : vector<4x1xf32> to vector<4x128xf32>
    %274 = vector.broadcast %272 : vector<1x128xf32> to vector<4x128xf32>
    %275 = arith.mulf %273, %274 : vector<4x128xf32>
    %276 = arith.addf %270, %275 : vector<4x128xf32>
    %277 = vector.extract_strided_slice %2 {offsets = [0, 12], sizes = [4, 1], strides = [1, 1]} : vector<4x16xf32> to vector<4x1xf32>
    %278 = vector.extract_strided_slice %205 {offsets = [12, 0], sizes = [1, 128], strides = [1, 1]} : vector<16x128xf32> to vector<1x128xf32>
    %279 = vector.broadcast %277 : vector<4x1xf32> to vector<4x128xf32>
    %280 = vector.broadcast %278 : vector<1x128xf32> to vector<4x128xf32>
    %281 = arith.mulf %279, %280 : vector<4x128xf32>
    %282 = arith.addf %276, %281 : vector<4x128xf32>
    %283 = vector.extract_strided_slice %2 {offsets = [0, 13], sizes = [4, 1], strides = [1, 1]} : vector<4x16xf32> to vector<4x1xf32>
    %284 = vector.extract_strided_slice %205 {offsets = [13, 0], sizes = [1, 128], strides = [1, 1]} : vector<16x128xf32> to vector<1x128xf32>
    %285 = vector.broadcast %283 : vector<4x1xf32> to vector<4x128xf32>
    %286 = vector.broadcast %284 : vector<1x128xf32> to vector<4x128xf32>
    %287 = arith.mulf %285, %286 : vector<4x128xf32>
    %288 = arith.addf %282, %287 : vector<4x128xf32>
    %289 = vector.extract_strided_slice %2 {offsets = [0, 14], sizes = [4, 1], strides = [1, 1]} : vector<4x16xf32> to vector<4x1xf32>
    %290 = vector.extract_strided_slice %205 {offsets = [14, 0], sizes = [1, 128], strides = [1, 1]} : vector<16x128xf32> to vector<1x128xf32>
    %291 = vector.broadcast %289 : vector<4x1xf32> to vector<4x128xf32>
    %292 = vector.broadcast %290 : vector<1x128xf32> to vector<4x128xf32>
    %293 = arith.mulf %291, %292 : vector<4x128xf32>
    %294 = arith.addf %288, %293 : vector<4x128xf32>
    %295 = vector.extract_strided_slice %2 {offsets = [0, 15], sizes = [4, 1], strides = [1, 1]} : vector<4x16xf32> to vector<4x1xf32>
    %296 = vector.extract_strided_slice %205 {offsets = [15, 0], sizes = [1, 128], strides = [1, 1]} : vector<16x128xf32> to vector<1x128xf32>
    %297 = vector.broadcast %295 : vector<4x1xf32> to vector<4x128xf32>
    %298 = vector.broadcast %296 : vector<1x128xf32> to vector<4x128xf32>
    %299 = arith.mulf %297, %298 : vector<4x128xf32>
    %300 = arith.addf %294, %299 : vector<4x128xf32>
    %301 = vector.broadcast %3 : vector<4x1xf32> to vector<4x128xf32>
    %302 = arith.addf %300, %301 : vector<4x128xf32>
    %c4_29 = arith.constant 4 : index
    %c0_30 = arith.constant 0 : index
    %303 = vector.load %arg6[%c4_29, %c0_30] : memref<8x128xf32, #tpu.memory_space<vmem>>, vector<4x128xf32>
    tpu.vector_store %arg6[%c4_29, %c0_30], %302 {strides = array<i32>} : memref<8x128xf32, #tpu.memory_space<vmem>>, vector<4x128xf32>,
    return
  }
  func.func @transform_0(%arg0: i32) -> (i32, i32) {
    %c0_i32 = arith.constant 0 : i32
    %c0_i32_0 = arith.constant 0 : i32
    return %c0_i32, %arg0 : i32, i32
  }
  func.func @transform_1(%arg0: i32) -> (i32, i32) {
    %c0_i32 = arith.constant 0 : i32
    %c0_i32_0 = arith.constant 0 : i32
    %c0_i32_1 = arith.constant 0 : i32
    return %c0_i32, %c0_i32_0 : i32, i32
  }
  func.func @transform_2(%arg0: i32) -> (i32, i32) {
    %c0_i32 = arith.constant 0 : i32
    %c0_i32_0 = arith.constant 0 : i32
    %c0_i32_1 = arith.constant 0 : i32
    return %c0_i32, %c0_i32_0 : i32, i32
  }
  func.func @transform_3(%arg0: i32) -> (i32, i32) {
    %c0_i32 = arith.constant 0 : i32
    %c0_i32_0 = arith.constant 0 : i32
    %c0_i32_1 = arith.constant 0 : i32
    return %c0_i32, %c0_i32_0 : i32, i32
  }
  func.func @transform_4(%arg0: i32) -> (i32, i32) {
    %c0_i32 = arith.constant 0 : i32
    %c0_i32_0 = arith.constant 0 : i32
    %c0_i32_1 = arith.constant 0 : i32
    return %c0_i32, %c0_i32_0 : i32, i32
  }
  func.func @transform_5(%arg0: i32) -> (i32, i32) {
    %c0_i32 = arith.constant 0 : i32
    %c0_i32_0 = arith.constant 0 : i32
    return %c0_i32, %arg0 : i32, i32
  }
}

</mosaic_0001>

<bundles_post_ra>
// kernel: prenorm_feed_forward.1
= control target key start
LH: loop header
LB: loop body
LE: loop exit
PB: predicated region body
PF: predicated region fallthrough
CT: control target
= control target key end

     0   :  { %s945_s18 = smov 0   ;;  %s1188_s0 = inlined_call_operand.vmem [shape: f32[8,256], index: 0, kind: input, shape index: {}]   ;;  %s1189_s1 = inlined_call_operand.vmem [shape: f32[16,4], index: 1, kind: input, shape index: {}]   ;;  %s1190_s2 = inlined_call_operand.vmem [shape: f32[16,1], index: 2, kind: input, shape index: {}]   ;;  %s1191_s3 = inlined_call_operand.vmem [shape: f32[4,16], index: 3, kind: input, shape index: {}]   ;;  %s1192_s4 = inlined_call_operand.vmem [shape: f32[4,1], index: 4, kind: input, shape index: {}]   ;;  %s1193_s5 = inlined_call_operand.vmem [shape: f32[8,256], index: 5, kind: output, shape index: {}]  }
   0x1 LB: > { %s811_s19 = sadd.s32 4294967295, %s896_s18   ;;  %p815_p0 = scmp.ge.s32.totalorder %s896_s18, 1  ;;  %s896_s18 = sphi %s945_s18, %s15_s18  }
   0x2   : > { %p186_p1 = scmp.lt.s32.totalorder %s896_s18, 3 }
   0x4   : > { %p187_p2 = pnand %p815_p0, %p186_p1 }
   0x5   : > { %p212_p3 = scmp.lt.s32.totalorder (!%p187_p2), %s811_s19, 1 }
   0x6   : > { %190 = sbr.rel (%p187_p2) target bundleno = 236 (0xec), region = 40 }
   0xb   : > { %v220_v0 = vld [vmem:[%s1189_s1] sm:$0xff]  ;;  %v898_v1 = vmov 1   ;;  %v899_v2 = vmov 0   ;;  %v900_v3 = vmov 2   ;;  %s1195_s19 = smov (!%p212_p3, %s811_s19), 1  ;;  %v901_v4 = vmov 4.0  }
   0xc   : > { %850 = vset.pattern.permute.xlu1 %v898_v1  ;;  %849 = vset.pattern.permute.xlu0 %v899_v2  ;;  %872 = vrcp.f32 %v901_v4  ;;  %s816_s22 = sshll.u32 %s1195_s19, 3  ;;  %vm227_vm0 = vcmask 1043456   ;;  %v221_v5 = vld [vmem:[%s1189_s1 + $0x8] sm:$0xff]  ;;  %v902_v16 = vmov 3   ;;  %v222_v20 = vld [vmem:[%s1190_s2] sm:$0xff]  ;;  %v903_v50 = vmov 4  }
   0xd   : > { %296 = vperm.xlu1 %850, %v220_v0   ;;  %284 = vperm.xlu0 %849, %v220_v0   ;;  %s215_s25 = scalar_lea.vmem %s1188_s0, %s816_s22  ;;  %v223_v32 = vld [vmem:[%s1190_s2 + $0x8] sm:$0xff]  ;;  %v986_v35 = vld [vmem:[%s1191_s3] sm:$0xf]  ;;  %v904_v55 = vmov 7   ;;  %v905_v56 = vmov 5   ;;  %v906_v57 = vmov 6   ;;  %s219_s13 = scalar_lea.vmem %s1193_s5, %s816_s22 }
   0xe   : > { %851 = vset.pattern.permute.xlu2 %v900_v3  ;;  %v226_v6 = vld [vmem:[%s215_s25] sm:$0xf]  ;;  %v553_v7 = vld [vmem:[%s215_s25 + $0x4] sm:$0xf]  ;;  %v907_v63 = vmov 12  }
   0xf   : > { %309 = vperm.xlu2 %851, %v220_v0   ;;  %v228_v8 = vsel %vm227_vm0, %v226_v6, 0.0  ;;  %v554_v9 = vsel %vm227_vm0, %v553_v7, 0.0 }
  0x10   : > { %v229_v10 = vrot.slane %v228_v8, 4  ;;  %v555_v11 = vrot.slane %v554_v9, 4 }
  0x12   : > { %v873_v12 = vpop.eup %872  ;;  %v230_v14 = vadd.f32 %v229_v10, %v228_v8  ;;  %v556_v15 = vadd.f32 %v555_v11, %v554_v9  ;;  %v910_v10 = vmov 10   ;;  %v911_v11 = vmov 11  }
  0x13   : > { %v236_v13 = vmul.f32 4.0, %v873_v12  ;;  %vm240_vm1 = vweird.f32 %v873_v12 }
  0x14   : > { %v231_v18 = vrot.slane %v230_v14, 2  ;;  %v557_v19 = vrot.slane %v556_v15, 2 }
  0x15   : > { %300 = vperm.xlu1 %850, %v221_v5   ;;  %289 = vperm.xlu0 %849, %v221_v5   ;;  %v237_v17 = vsub.f32 1.0, %v236_v13 }
  0x16   : > { %v232_v22 = vadd.f32 %v231_v18, %v230_v14  ;;  %v558_v23 = vadd.f32 %v557_v19, %v556_v15  ;;  %v912_v18 = vmov 13  }
  0x17   : > { %852 = vset.pattern.permute.xlu2 %v902_v16  ;;  %v238_v21 = vmul.f32 %v873_v12, %v237_v17 }
  0x18   : > { %322 = vperm.xlu2 %852, %v220_v0   ;;  %v233_v25 = vrot.slane %v232_v22, 1  ;;  %v559_v26 = vrot.slane %v558_v23, 1 }
  0x19   : > { %v239_v24 = vadd.f32 %v873_v12, %v238_v21  ;;  %v913_v21 = vmov 14  }
  0x1a   : > { %v234_v28 = vadd.f32 %v233_v25, %v232_v22  ;;  %v560_v29 = vadd.f32 %v559_v26, %v558_v23 }
  0x1b   : > { %v241_v27 = vsel %vm240_vm1, %v873_v12, %v239_v24  ;;  %v914_v24 = vmov 15  }
  0x1c   : > { %v242_v30 = vmul.f32 %v241_v27, %v234_v28  ;;  %v561_v31 = vmul.f32 %v560_v29, %v241_v27 }
  0x1d   : > { %853 = vset.pattern.permute.xlu1 %v900_v3  ;;  %336 = vperm.xlu0 %849, %v222_v20  }
  0x1e   : > { %313 = vperm.xlu1 %853, %v221_v5   ;;  %v979_v33 = vsub.f32 %v226_v6, %v242_v30  ;;  %v981_v34 = vsub.f32 %v553_v7, %v561_v31  ;;  %v225_v31 = vld [vmem:[%s1192_s4] sm:$0xf] }
  0x20   : > { %326 = vperm.xlu2 %852, %v221_v5   ;;  %v244_v36 = vmul.f32 %v979_v33, %v979_v33  ;;  %v563_v37 = vmul.f32 %v981_v34, %v981_v34  ;;  %v909_v5 = vmov 9  }
  0x22   : > { %v245_v38 = vsel %vm227_vm0, %v244_v36, 0.0  ;;  %v564_v39 = vsel %vm227_vm0, %v563_v37, 0.0 }
  0x23   : > { %v246_v40 = vrot.slane %v245_v38, 4  ;;  %v565_v41 = vrot.slane %v564_v39, 4 }
  0x25   : > { %341 = vperm.xlu0 %849, %v223_v32   ;;  %v247_v42 = vadd.f32 %v246_v40, %v245_v38  ;;  %v566_v43 = vadd.f32 %v565_v41, %v564_v39 }
  0x26   : > { %854 = vset.pattern.permute.xlu1 %v899_v2 }
  0x27   : > { %436 = vperm.xlu1 %854, %v986_v35   ;;  %v248_v44 = vrot.slane %v247_v42, 2  ;;  %v567_v45 = vrot.slane %v566_v43, 2 }
  0x28   : > { %855 = vset.pattern.permute.xlu2 %v898_v1 }
  0x29   : > { %442 = vperm.xlu2 %855, %v986_v35   ;;  %v249_v46 = vadd.f32 %v248_v44, %v247_v42  ;;  %v568_v47 = vadd.f32 %v567_v45, %v566_v43 }
  0x2b   : > { %v250_v48 = vrot.slane %v249_v46, 1  ;;  %v569_v49 = vrot.slane %v568_v47, 1 }
  0x2d   : > { %856 = vset.pattern.permute.xlu0 %v900_v3  ;;  %v251_v51 = vadd.f32 %v250_v48, %v249_v46  ;;  %v570_v52 = vadd.f32 %v569_v49, %v568_v47  ;;  %v908_v3 = vmov 8  }
  0x2e   : > { %449 = vperm.xlu0 %856, %v986_v35  }
  0x2f   : > { %857 = vset.pattern.permute.xlu1 %v902_v16  ;;  %v252_v53 = vmul.f32 %v251_v51, %v241_v27  ;;  %v571_v54 = vmul.f32 %v570_v52, %v241_v27 }
  0x30   : > { %456 = vperm.xlu1 %857, %v986_v35  }
  0x31   : > { %858 = vset.pattern.permute.xlu2 %v903_v50  ;;  %874 = vrsqrt.f32 %v252_v53  ;;  %vm260_vm2 = vcmp.eq.f32.partialorder %v252_v53, inf  ;;  %vm579_vm3 = vcmp.eq.f32.partialorder %v571_v54, inf  ;;  %v263_v14 = vand.u32 2147483648, %v252_v53 }
  0x32   : > { %463 = vperm.xlu2 %858, %v986_v35   ;;  %876 = vrsqrt.f32 %v571_v54  ;;  %vm262_vm4 = vcmp.eq.f32.partialorder %v252_v53, 0.0  ;;  %v582_v16 = vand.u32 2147483648, %v571_v54  ;;  %vm581_vm5 = vcmp.eq.f32.partialorder %v571_v54, 0.0 }
  0x36   : > { %861 = vset.pattern.permute.xlu0 %v904_v55 }
  0x37   : > { %484 = vperm.xlu0 %861, %v986_v35   ;;  %v875_v58 = vpop.eup %874 }
  0x38   : > { %859 = vset.pattern.permute.xlu1 %v905_v56  ;;  %v877_v59 = vpop.eup %876  ;;  %v254_v60 = vmul.f32 %v875_v58, %v252_v53 }
  0x39   : > { %470 = vperm.xlu1 %859, %v986_v35   ;;  %v573_v61 = vmul.f32 %v877_v59, %v571_v54 }
  0x3a   : > { %860 = vset.pattern.permute.xlu2 %v906_v57  ;;  %v255_v62 = vmul.f32 %v875_v58, %v254_v60 }
  0x3b   : > { %477 = vperm.xlu2 %860, %v986_v35   ;;  %v574_v0 = vmul.f32 %v877_v59, %v573_v61 }
  0x3c   : > { %v256_v1 = vmul.f32 0.5, %v255_v62 }
  0x3d   : > { %v575_v4 = vmul.f32 0.5, %v574_v0 }
  0x3e   : > { %v257_v6 = vsub.f32 1.5, %v256_v1 }
  0x3f   : > { %866 = vset.pattern.permute.xlu0 %v907_v63  ;;  %v576_v7 = vsub.f32 1.5, %v575_v4 }
  0x40   : > { %519 = vperm.xlu0 %866, %v986_v35   ;;  %v258_v8 = vmul.f32 %v875_v58, %v257_v6 }
  0x41   : > { %862 = vset.pattern.permute.xlu1 %v908_v3  ;;  %v577_v9 = vmul.f32 %v877_v59, %v576_v7 }
  0x42   : > { %491 = vperm.xlu1 %862, %v986_v35   ;;  %v259_v12 = vmul.f32 %v258_v8, %v252_v53 }
  0x43   : > { %863 = vset.pattern.permute.xlu2 %v909_v5  ;;  %v578_v13 = vmul.f32 %v577_v9, %v571_v54 }
  0x44   : > { %498 = vperm.xlu2 %863, %v986_v35   ;;  %v261_v15 = vsel %vm260_vm2, %v252_v53, %v259_v12 }
  0x45   : > { %v580_v17 = vsel %vm579_vm3, %v571_v54, %v578_v13  ;;  %v264_v19 = vsel %vm262_vm4, %v263_v14, %v261_v15 }
  0x46   : > { %v583_v20 = vsel %vm581_vm5, %v582_v16, %v580_v17  ;;  %v265_v22 = vadd.f32 1e-05, %v264_v19 }
  0x47   : > { %v584_v23 = vadd.f32 1e-05, %v583_v20 }
  0x48   : > { %871 = vset.pattern.permute.xlu0 %v899_v2  ;;  %878 = vrcp.f32 %v265_v22  ;;  %vm271_vm6 = vweird.f32 %v265_v22  ;;  %v275_v38 = vand.u32 2147483647, %v265_v22 }
  0x49   : > { %880 = vrcp.f32 %v584_v23  ;;  %vm590_vm8 = vweird.f32 %v584_v23  ;;  %v596_v37 = vand.u32 2147483648, %v584_v23  ;;  %v594_v40 = vand.u32 2147483647, %v584_v23 }
  0x4a   : > { %864 = vset.pattern.permute.xlu1 %v910_v10  ;;  %vm276_vm12 = vcmp.eq.f32.partialorder %v275_v38, 8.507059e+37 }
  0x4b   : > { %505 = vperm.xlu1 %864, %v986_v35   ;;  %v597_v42 = vor.u32 1.1754944e-38, %v596_v37  ;;  %vm595_vm13 = vcmp.eq.f32.partialorder %v594_v40, 8.507059e+37 }
  0x4c   : > { %865 = vset.pattern.permute.xlu2 %v911_v11 }
  0x4d   : > { %512 = vperm.xlu2 %865, %v986_v35  }
  0x4e   : > { %v879_v25 = vpop.eup %878 }
  0x4f   : > { %v881_v26 = vpop.eup %880  ;;  %v267_v27 = vmul.f32 %v879_v25, %v265_v22  ;;  %vm272_vm7 = vweird.f32 %v879_v25 }
  0x50   : > { %v586_v28 = vmul.f32 %v881_v26, %v584_v23  ;;  %vm591_vm9 = vweird.f32 %v881_v26  ;;  %vm273_vm10 = vmor %vm271_vm6, %vm272_vm7 }
  0x51   : > { %v268_v29 = vsub.f32 1.0, %v267_v27  ;;  %vm592_vm11 = vmor %vm590_vm8, %vm591_vm9 }
  0x52   : > { %v587_v30 = vsub.f32 1.0, %v586_v28 }
  0x53   : > { %867 = vset.pattern.permute.xlu1 %v912_v18  ;;  %v269_v32 = vmul.f32 %v879_v25, %v268_v29 }
  0x54   : > { %526 = vperm.xlu1 %867, %v986_v35   ;;  %v588_v36 = vmul.f32 %v881_v26, %v587_v30 }
  0x55   : > { %868 = vset.pattern.permute.xlu2 %v913_v21 }
  0x56   : > { %533 = vperm.xlu2 %868, %v986_v35   ;;  %v589_v39 = vadd.f32 %v881_v26, %v588_v36 }
  0x58   : > { %v593_v44 = vsel %vm592_vm11, %v881_v26, %v589_v39 }
  0x59   : > { %v598_v46 = vsel %vm595_vm13, %v597_v42, %v593_v44 }
  0x5a   : > { %v600_v48 = vmul.f32 %v598_v46, %v981_v34 }
  0x5c   : > { %869 = vset.pattern.permute.xlu1 %v914_v24  ;;  %v604_v51 = vperm.slane %v600_v48, 1  ;;  %v601_v53 = vperm.slane %v600_v48, 0  ;;  %v609_v57 = vperm.slane %v600_v48, 2  ;;  %v614_v63 = vperm.slane %v600_v48, 3 }
  0x5d   : > { %540 = vperm.xlu1 %869, %v986_v35   ;;  %v277_v35 = vand.u32 2147483648, %v265_v22 }
  0x5e   : > { %870 = vset.pattern.permute.xlu2 %v899_v2  ;;  %v270_v2 = vadd.f32 %v879_v25, %v269_v32 }
  0x5f   : > { %548 = vperm.xlu2 %870, %v225_v31   ;;  %v278_v41 = vor.u32 1.1754944e-38, %v277_v35 }
  0x60   : > { %v274_v43 = vsel %vm273_vm10, %v879_v25, %v270_v2 }
  0x61   : > { %v279_v45 = vsel %vm276_vm12, %v278_v41, %v274_v43 }
  0x62   : > { %v281_v47 = vmul.f32 %v279_v45, %v979_v33 }
  0x64   : > { %v303_v50 = vperm.slane %v281_v47, 1  ;;  %v292_v52 = vperm.slane %v281_v47, 0  ;;  %v316_v56 = vperm.slane %v281_v47, 2  ;;  %v329_v62 = vperm.slane %v281_v47, 3 }
  0x69   : > { %v310_v49 = vpop.permute.xlu2 %309 }
  0x6a   : > { %v317_v0 = vmul.f32 %v316_v56, %v310_v49  ;;  %v610_v1 = vmul.f32 %v609_v57, %v310_v49 }
  0x72   : > { %v323_v34 = vpop.permute.xlu2 %322 }
  0x73   : > { %v330_v6 = vmul.f32 %v329_v62, %v323_v34  ;;  %v615_v7 = vmul.f32 %v614_v63, %v323_v34 }
  0x7a   : > { %v327_v17 = vpop.permute.xlu2 %326 }
  0x7b   : > { %v331_v27 = vmul.f32 %v329_v62, %v327_v17  ;;  %v616_v28 = vmul.f32 %v614_v63, %v327_v17 }
  0x7f   : > { %v297_v54 = vpop.permute.xlu1 %296  ;;  %v285_v55 = vpop.permute.xlu0 %284 }
  0x80   : > { %v304_v58 = vmul.f32 %v303_v50, %v297_v54  ;;  %v605_v59 = vmul.f32 %v604_v51, %v297_v54  ;;  %v293_v60 = vmul.f32 %v292_v52, %v285_v55  ;;  %v602_v61 = vmul.f32 %v601_v53, %v285_v55 }
  0x82   : > { %v306_v33 = vadd.f32 %v304_v58, %v293_v60  ;;  %v607_v3 = vadd.f32 %v605_v59, %v602_v61 }
  0x84   : > { %v319_v8 = vadd.f32 %v317_v0, %v306_v33  ;;  %v612_v9 = vadd.f32 %v610_v1, %v607_v3 }
  0x86   : > { %v332_v14 = vadd.f32 %v330_v6, %v319_v8  ;;  %v617_v15 = vadd.f32 %v615_v7, %v612_v9 }
  0x87   : > { %v301_v4 = vpop.permute.xlu1 %300  ;;  %v290_v5 = vpop.permute.xlu0 %289 }
  0x88   : > { %v305_v10 = vmul.f32 %v303_v50, %v301_v4  ;;  %v606_v11 = vmul.f32 %v604_v51, %v301_v4  ;;  %v294_v12 = vmul.f32 %v292_v52, %v290_v5  ;;  %v603_v13 = vmul.f32 %v601_v53, %v290_v5 }
  0x8a   : > { %v307_v21 = vadd.f32 %v305_v10, %v294_v12  ;;  %v608_v22 = vadd.f32 %v606_v11, %v603_v13 }
  0x8f   : > { %v337_v16 = vpop.permute.xlu0 %336 }
  0x90   : > { %v1020_v18 = vadd.f32 %v337_v16, %v332_v14  ;;  %v1022_v19 = vadd.f32 %v617_v15, %v337_v16  ;;  %v314_v20 = vpop.permute.xlu1 %313 }
  0x91   : > { %v318_v23 = vmul.f32 %v316_v56, %v314_v20  ;;  %v611_v24 = vmul.f32 %v609_v57, %v314_v20 }
  0x92   : > { %v1025_v25 = vmul.f32 0.70710677, %v1020_v18  ;;  %v1028_v26 = vmul.f32 0.70710677, %v1022_v19 }
  0x93   : > { %v320_v29 = vadd.f32 %v318_v23, %v307_v21  ;;  %v613_v30 = vadd.f32 %v611_v24, %v608_v22 }
  0x94   : > { %v350_v31 = vmul.f32 %v1025_v25, %v1025_v25  ;;  %v625_v32 = vmul.f32 %v1028_v26, %v1028_v26 }
  0x95   : > { %v333_v36 = vadd.f32 %v331_v27, %v320_v29  ;;  %v618_v35 = vadd.f32 %v616_v28, %v613_v30 }
  0x96   : > { %v1034_v37 = vmin.f32 %v350_v31, 16.0  ;;  %v1036_v2 = vmin.f32 %v625_v32, 16.0 }
  0x97   : > { %v342_v38 = vpop.permute.xlu0 %341 }
  0x98   : > { %v352_v39 = vmul.f32 2.1237322e-06, %v1034_v37  ;;  %v363_v40 = vmul.f32 3.8918573e-05, %v1034_v37  ;;  %v627_v41 = vmul.f32 2.1237322e-06, %v1036_v2  ;;  %v1041_v42 = vadd.f32 %v342_v38, %v333_v36 }
  0x99   : > { %v638_v43 = vmul.f32 3.8918573e-05, %v1036_v2  ;;  %v1044_v44 = vadd.f32 %v618_v35, %v342_v38  ;;  %v1081_v36 = vpop.permute.xlu1 %436 }
  0x9a   : > { %v353_v45 = vadd.f32 0.00028619796, %v352_v39  ;;  %v364_v46 = vadd.f32 0.001143296, %v363_v40  ;;  %v628_v47 = vadd.f32 0.00028619796, %v627_v41 }
  0x9b   : > { %v639_v48 = vadd.f32 0.001143296, %v638_v43  ;;  %v1047_v49 = vmul.f32 0.70710677, %v1041_v42  ;;  %v1053_v53 = vmul.f32 0.70710677, %v1044_v44 }
  0x9c   : > { %v354_v50 = vmul.f32 %v353_v45, %v1034_v37  ;;  %v365_v51 = vmul.f32 %v364_v46, %v1034_v37  ;;  %v629_v52 = vmul.f32 %v628_v47, %v1036_v2 }
  0x9d   : > { %v640_v54 = vmul.f32 %v639_v48, %v1036_v2  ;;  %v390_v55 = vmul.f32 %v1047_v49, %v1047_v49  ;;  %v665_v59 = vmul.f32 %v1053_v53, %v1053_v53 }
  0x9e   : > { %v355_v56 = vadd.f32 0.0036580483, %v354_v50  ;;  %v366_v57 = vadd.f32 0.014752088, %v365_v51  ;;  %v630_v58 = vadd.f32 0.0036580483, %v629_v52  ;;  %v1089_v52 = vpop.permute.xlu2 %442 }
  0x9f   : > { %v641_v60 = vadd.f32 0.014752088, %v640_v54  ;;  %v1060_v61 = vmin.f32 %v390_v55, 16.0  ;;  %v1065_v1 = vmin.f32 %v665_v59, 16.0 }
  0xa0   : > { %v356_v62 = vmul.f32 %v355_v56, %v1034_v37  ;;  %v367_v63 = vmul.f32 %v366_v57, %v1034_v37  ;;  %v631_v0 = vmul.f32 %v630_v58, %v1036_v2 }
  0xa1   : > { %v642_v33 = vmul.f32 %v641_v60, %v1036_v2  ;;  %v392_v3 = vmul.f32 2.1237322e-06, %v1060_v61  ;;  %v403_v34 = vmul.f32 3.8918573e-05, %v1060_v61  ;;  %v667_v12 = vmul.f32 2.1237322e-06, %v1065_v1 }
  0xa2   : > { %v357_v4 = vadd.f32 0.05243302, %v356_v62  ;;  %v368_v5 = vadd.f32 0.112945676, %v367_v63  ;;  %v632_v11 = vadd.f32 0.05243302, %v631_v0 }
  0xa3   : > { %v643_v6 = vadd.f32 0.112945676, %v642_v33  ;;  %v393_v7 = vadd.f32 0.00028619796, %v392_v3  ;;  %v404_v8 = vadd.f32 0.001143296, %v403_v34  ;;  %v1095_v3 = vpop.permute.xlu1 %456 }
  0xa4   : > { %v358_v9 = vmul.f32 %v357_v4, %v1034_v37  ;;  %v369_v10 = vmul.f32 %v368_v5, %v1034_v37  ;;  %v678_v16 = vmul.f32 3.8918573e-05, %v1065_v1  ;;  %v633_v24 = vmul.f32 %v632_v11, %v1036_v2 }
  0xa5   : > { %v644_v13 = vmul.f32 %v643_v6, %v1036_v2  ;;  %v394_v14 = vmul.f32 %v393_v7, %v1060_v61  ;;  %v405_v15 = vmul.f32 %v404_v8, %v1060_v61  ;;  %v668_v27 = vadd.f32 0.00028619796, %v667_v12 }
  0xa6   : > { %v370_v17 = vadd.f32 0.4994258, %v369_v10  ;;  %v359_v22 = vadd.f32 0.18741608, %v358_v9  ;;  %v679_v31 = vadd.f32 0.001143296, %v678_v16 }
  0xa7   : > { %v645_v20 = vadd.f32 0.4994258, %v644_v13  ;;  %v406_v21 = vadd.f32 0.014752088, %v405_v15  ;;  %v395_v29 = vadd.f32 0.0036580483, %v394_v14  ;;  %v669_v39 = vmul.f32 %v668_v27, %v1065_v1 }
  0xa8   : > { %v371_v23 = vmul.f32 %v370_v17, %v1034_v37  ;;  %v680_v40 = vmul.f32 %v679_v31, %v1065_v1  ;;  %v360_v41 = vmul.f32 %v359_v22, %v1034_v37  ;;  %v634_v43 = vadd.f32 0.18741608, %v633_v24  ;;  %v1104_v22 = vpop.permute.xlu2 %463 }
  0xa9   : > { %v646_v28 = vmul.f32 %v645_v20, %v1036_v2  ;;  %v407_v30 = vmul.f32 %v406_v21, %v1060_v61  ;;  %v396_v45 = vmul.f32 %v395_v29, %v1060_v61  ;;  %v670_v47 = vadd.f32 0.0036580483, %v669_v39 }
  0xaa   : > { %v372_v32 = vadd.f32 1.0, %v371_v23  ;;  %v681_v48 = vadd.f32 0.014752088, %v680_v40  ;;  %v361_v50 = vadd.f32 1.1283791, %v360_v41  ;;  %v635_v51 = vmul.f32 %v634_v43, %v1036_v2 }
  0xab   : > { %v647_v35 = vadd.f32 1.0, %v646_v28  ;;  %v408_v38 = vadd.f32 0.112945676, %v407_v30  ;;  %v397_v54 = vadd.f32 0.05243302, %v396_v45  ;;  %v671_v60 = vmul.f32 %v670_v47, %v1065_v1  ;;  %v1110_v40 = vpop.permute.xlu1 %470 }
  0xac   : > { %882 = vrcp.f32 %v372_v32  ;;  %v682_v56 = vmul.f32 %v681_v48, %v1065_v1  ;;  %v362_v62 = vmul.f32 %v361_v50, %v1025_v25  ;;  %v636_v63 = vadd.f32 1.1283791, %v635_v51 }
  0xad   : > { %884 = vrcp.f32 %v647_v35  ;;  %v409_v46 = vmul.f32 %v408_v38, %v1060_v61  ;;  %v382_v34 = vand.u32 2147483647, %v372_v32  ;;  %v398_v4 = vmul.f32 %v397_v54, %v1060_v61 }
  0xae   : > { %v683_v33 = vadd.f32 0.112945676, %v682_v56  ;;  %v384_v6 = vand.u32 2147483648, %v372_v32  ;;  %v659_v8 = vand.u32 2147483648, %v647_v35  ;;  %v672_v25 = vadd.f32 0.05243302, %v671_v60 }
  0xaf   : > { %v410_v55 = vadd.f32 0.4994258, %v409_v46  ;;  %v657_v12 = vand.u32 2147483647, %v647_v35  ;;  %vm378_vm0 = vweird.f32 %v372_v32  ;;  %v637_v15 = vmul.f32 %v636_v63, %v1028_v26 }
  0xb0   : > { %v684_v9 = vmul.f32 %v683_v33, %v1065_v1  ;;  %v399_v16 = vadd.f32 0.18741608, %v398_v4  ;;  %v385_v17 = vor.u32 1.1754944e-38, %v384_v6  ;;  %vm653_vm2 = vweird.f32 %v647_v35 }
  0xb1   : > { %v411_v59 = vmul.f32 %v410_v55, %v1060_v61  ;;  %vm383_vm3 = vcmp.eq.f32.partialorder %v382_v34, 8.507059e+37  ;;  %v660_v24 = vor.u32 1.1754944e-38, %v659_v8  ;;  %v673_v27 = vmul.f32 %v672_v25, %v1065_v1 }
  0xb2   : > { %v883_v57 = vpop.eup %882  ;;  %v685_v13 = vadd.f32 0.4994258, %v684_v9  ;;  %vm658_vm5 = vcmp.eq.f32.partialorder %v657_v12, 8.507059e+37  ;;  %v346_v45 = vmul.f32 0.5, %v1020_v18  ;;  %v621_v50 = vmul.f32 0.5, %v1022_v19 }
  0xb3   : > { %v885_v37 = vpop.eup %884  ;;  %v374_v58 = vmul.f32 %v883_v57, %v372_v32  ;;  %v1098_v5 = vadd.f32 1.0, %v411_v59  ;;  %vm379_vm14 = vweird.f32 %v883_v57  ;;  %v674_v43 = vadd.f32 0.18741608, %v673_v27  ;;  %v1122_v59 = vpop.permute.xlu2 %477 }
  0xb4   : > { %v649_v0 = vmul.f32 %v885_v37, %v647_v35  ;;  %vm654_vm15 = vweird.f32 %v885_v37  ;;  %vm380_vm1 = vmor %vm378_vm0, %vm379_vm14  ;;  %v686_v21 = vmul.f32 %v685_v13, %v1065_v1  ;;  %v400_v35 = vmul.f32 %v399_v16, %v1060_v61  ;;  %v450_v16 = vpop.permute.xlu0 %449 }
  0xb5   : > { %v375_v2 = vsub.f32 1.0, %v374_v58  ;;  %886 = vrcp.f32 %v1098_v5  ;;  %vm655_vm4 = vmor %vm653_vm2, %vm654_vm15  ;;  %v424_v54 = vand.u32 2147483648, %v1098_v5  ;;  %v422_v56 = vand.u32 2147483647, %v1098_v5 }
  0xb6   : > { %v650_v7 = vsub.f32 1.0, %v649_v0  ;;  %v687_v26 = vadd.f32 1.0, %v686_v21  ;;  %v401_v51 = vadd.f32 1.1283791, %v400_v35  ;;  %vm418_vm7 = vweird.f32 %v1098_v5 }
  0xb7   : > { %v376_v10 = vmul.f32 %v883_v57, %v375_v2  ;;  %vm423_vm9 = vcmp.eq.f32.partialorder %v422_v56, 8.507059e+37 }
  0xb8   : > { %v651_v11 = vmul.f32 %v885_v37, %v650_v7  ;;  %888 = vrcp.f32 %v687_v26  ;;  %v402_v60 = vmul.f32 %v401_v51, %v1047_v49  ;;  %v697_v8 = vand.u32 2147483647, %v687_v26  ;;  %v1129_v49 = vpop.permute.xlu1 %491 }
  0xb9   : > { %v377_v14 = vadd.f32 %v883_v57, %v376_v10  ;;  %v699_v9 = vand.u32 2147483648, %v687_v26  ;;  %vm693_vm11 = vweird.f32 %v687_v26 }
  0xba   : > { %v652_v20 = vadd.f32 %v885_v37, %v651_v11  ;;  %vm698_vm12 = vcmp.eq.f32.partialorder %v697_v8, 8.507059e+37 }
  0xbb   : > { %v381_v23 = vsel %vm380_vm1, %v883_v57, %v377_v14  ;;  %v887_v30 = vpop.eup %886 }
  0xbc   : > { %v386_v28 = vsel %vm383_vm3, %v385_v17, %v381_v23  ;;  %v656_v29 = vsel %vm655_vm4, %v885_v37, %v652_v20  ;;  %v414_v39 = vmul.f32 %v887_v30, %v1098_v5  ;;  %vm419_vm6 = vweird.f32 %v887_v30 }
  0xbd   : > { %v387_v31 = vmul.f32 %v386_v28, %v362_v62  ;;  %v661_v32 = vsel %vm658_vm5, %v660_v24, %v656_v29  ;;  %v675_v37 = vmul.f32 %v674_v43, %v1065_v1  ;;  %vm420_vm8 = vmor %vm418_vm7, %vm419_vm6  ;;  %v425_v62 = vor.u32 1.1754944e-38, %v424_v54 }
  0xbe   : > { %v662_v38 = vmul.f32 %v661_v32, %v637_v15  ;;  %v415_v47 = vsub.f32 1.0, %v414_v39  ;;  %v889_v19 = vpop.eup %888  ;;  %v700_v20 = vor.u32 1.1754944e-38, %v699_v9  ;;  %v347_v32 = vmul.f32 0.5, %v1041_v42 }
  0xbf   : > { %v818_v41 = vclamps-f32 %v387_v31, 1.0  ;;  %v689_v2 = vmul.f32 %v889_v19, %v687_v26  ;;  %v676_v4 = vadd.f32 1.1283791, %v675_v37  ;;  %vm694_vm10 = vweird.f32 %v889_v19 }
  0xc0   : > { %v820_v46 = vclamps-f32 %v662_v38, 1.0  ;;  %v416_v61 = vmul.f32 %v887_v30, %v415_v47  ;;  %vm695_vm13 = vmor %vm693_vm11, %vm694_vm10  ;;  %v506_v54 = vpop.permute.xlu1 %505 }
  0xc1   : > { %v430_v48 = vadd.f32 1.0, %v818_v41  ;;  %v690_v7 = vsub.f32 1.0, %v689_v2  ;;  %v677_v15 = vmul.f32 %v676_v4, %v1053_v53  ;;  %v622_v41 = vmul.f32 0.5, %v1044_v44 }
  0xc2   : > { %v705_v55 = vadd.f32 1.0, %v820_v46  ;;  %v417_v18 = vadd.f32 %v887_v30, %v416_v61 }
  0xc3   : > { %v1116_v57 = vmul.f32 %v430_v48, %v346_v45  ;;  %v691_v12 = vmul.f32 %v889_v19, %v690_v7 }
  0xc4   : > { %v1119_v58 = vmul.f32 %v705_v55, %v621_v50  ;;  %v421_v33 = vsel %vm420_vm8, %v887_v30, %v417_v18  ;;  %v499_v30 = vpop.permute.xlu2 %498 }
  0xc5   : > { %v439_v63 = vperm.slane %v1116_v57, 0  ;;  %v445_v0 = vperm.slane %v1116_v57, 1  ;;  %v426_v34 = vsel %vm423_vm9, %v425_v62, %v421_v33  ;;  %v692_v17 = vadd.f32 %v889_v19, %v691_v12 }
  0xc6   : > { %v709_v1 = vperm.slane %v1119_v58, 0  ;;  %v711_v5 = vperm.slane %v1119_v58, 1  ;;  %v427_v6 = vmul.f32 %v426_v34, %v402_v60  ;;  %v459_v23 = vperm.slane %v1116_v57, 3 }
  0xc7   : > { %v440_v10 = vmul.f32 %v439_v63, %v1081_v36  ;;  %v446_v25 = vmul.f32 %v445_v0, %v1089_v52  ;;  %v717_v24 = vperm.slane %v1119_v58, 3  ;;  %v452_v27 = vperm.slane %v1116_v57, 2  ;;  %v485_v63 = vpop.permute.xlu0 %484 }
  0xc8   : > { %v819_v11 = vclamps-f32 %v427_v6, 1.0  ;;  %v710_v13 = vmul.f32 %v709_v1, %v1081_v36  ;;  %v712_v14 = vmul.f32 %v711_v5, %v1089_v52  ;;  %v696_v29 = vsel %vm695_vm13, %v889_v19, %v692_v17 }
  0xc9   : > { %v447_v21 = vadd.f32 %v446_v25, %v440_v10  ;;  %v714_v52 = vperm.slane %v1119_v58, 2  ;;  %v701_v53 = vsel %vm698_vm12, %v700_v20, %v696_v29  ;;  %v466_v31 = vperm.slane %v1116_v57, 4 }
  0xca   : > { %v431_v28 = vadd.f32 1.0, %v819_v11  ;;  %v713_v36 = vadd.f32 %v712_v14, %v710_v13  ;;  %v453_v26 = vmul.f32 %v452_v27, %v450_v16  ;;  %v702_v35 = vmul.f32 %v701_v53, %v677_v15  ;;  %v527_v15 = vpop.permute.xlu1 %526 }
  0xcb   : > { %v720_v38 = vperm.slane %v1119_v58, 4  ;;  %v715_v39 = vmul.f32 %v714_v52, %v450_v16  ;;  %v460_v43 = vmul.f32 %v459_v23, %v1095_v3  ;;  %v473_v45 = vperm.slane %v1116_v57, 5 }
  0xcc   : > { %v454_v46 = vadd.f32 %v453_v26, %v447_v21  ;;  %v1146_v47 = vmul.f32 %v431_v28, %v347_v32  ;;  %v821_v48 = vclamps-f32 %v702_v35, 1.0  ;;  %v718_v50 = vmul.f32 %v717_v24, %v1095_v3  ;;  %v513_v7 = vpop.permute.xlu2 %512 }
  0xcd   : > { %v716_v51 = vadd.f32 %v715_v39, %v713_v36  ;;  %v467_v42 = vmul.f32 %v466_v31, %v1104_v22  ;;  %v723_v55 = vperm.slane %v1119_v58, 5  ;;  %v480_v61 = vperm.slane %v1116_v57, 6 }
  0xce   : > { %v461_v56 = vadd.f32 %v460_v43, %v454_v46  ;;  %v706_v44 = vadd.f32 1.0, %v821_v48  ;;  %v721_v37 = vmul.f32 %v720_v38, %v1104_v22  ;;  %v726_v18 = vperm.slane %v1119_v58, 6 }
  0xcf   : > { %v719_v19 = vadd.f32 %v718_v50, %v716_v51  ;;  %v474_v60 = vmul.f32 %v473_v45, %v1110_v40  ;;  %v487_v3 = vperm.slane %v1116_v57, 7  ;;  %v494_v33 = vperm.slane %v1146_v47, 0  ;;  %v520_v52 = vpop.permute.xlu0 %519 }
  0xd0   : > { %v468_v62 = vadd.f32 %v467_v42, %v461_v56  ;;  %v1156_v0 = vmul.f32 %v706_v44, %v622_v41  ;;  %v724_v1 = vmul.f32 %v723_v55, %v1110_v40  ;;  %v481_v34 = vmul.f32 %v480_v61, %v1122_v59 }
  0xd1   : > { %v722_v2 = vadd.f32 %v721_v37, %v719_v19  ;;  %v729_v22 = vperm.slane %v1119_v58, 7  ;;  %v727_v5 = vmul.f32 %v726_v18, %v1122_v59  ;;  %v501_v6 = vperm.slane %v1146_v47, 1 }
  0xd2   : > { %v475_v4 = vadd.f32 %v474_v60, %v468_v62  ;;  %v732_v8 = vperm.slane %v1156_v0, 0  ;;  %v488_v9 = vmul.f32 %v487_v3, %v485_v63  ;;  %v495_v25 = vmul.f32 %v494_v33, %v1129_v49  ;;  %v541_v56 = vpop.permute.xlu1 %540 }
  0xd3   : > { %v725_v10 = vadd.f32 %v724_v1, %v722_v2  ;;  %v508_v11 = vperm.slane %v1146_v47, 2  ;;  %v735_v40 = vperm.slane %v1156_v0, 1  ;;  %v730_v14 = vmul.f32 %v729_v22, %v485_v63 }
  0xd4   : > { %v482_v57 = vadd.f32 %v481_v34, %v475_v4  ;;  %v502_v58 = vmul.f32 %v501_v6, %v499_v30  ;;  %v515_v59 = vperm.slane %v1146_v47, 3  ;;  %v733_v16 = vmul.f32 %v732_v8, %v1129_v49  ;;  %v534_v38 = vpop.permute.xlu2 %533 }
  0xd5   : > { %v728_v13 = vadd.f32 %v727_v5, %v725_v10  ;;  %v738_v17 = vperm.slane %v1156_v0, 2  ;;  %v509_v23 = vmul.f32 %v508_v11, %v506_v54  ;;  %v522_v24 = vperm.slane %v1146_v47, 4 }
  0xd6   : > { %v489_v12 = vadd.f32 %v488_v9, %v482_v57  ;;  %v736_v27 = vmul.f32 %v735_v40, %v499_v30  ;;  %v741_v28 = vperm.slane %v1156_v0, 3  ;;  %v516_v53 = vmul.f32 %v515_v59, %v513_v7 }
  0xd7   : > { %v731_v21 = vadd.f32 %v730_v14, %v728_v13  ;;  %v529_v31 = vperm.slane %v1146_v47, 5  ;;  %v739_v26 = vmul.f32 %v738_v17, %v506_v54  ;;  %v744_v49 = vperm.slane %v1156_v0, 4 }
  0xd8   : > { %v496_v20 = vadd.f32 %v495_v25, %v489_v12  ;;  %v536_v39 = vperm.slane %v1146_v47, 6  ;;  %v523_v41 = vmul.f32 %v522_v24, %v520_v52  ;;  %v742_v43 = vmul.f32 %v741_v28, %v513_v7 }
  0xd9   : > { %v734_v36 = vadd.f32 %v733_v16, %v731_v21  ;;  %v747_v30 = vperm.slane %v1156_v0, 5  ;;  %v530_v48 = vmul.f32 %v529_v31, %v527_v15  ;;  %v543_v50 = vperm.slane %v1146_v47, 7 }
  0xda   : > { %v503_v29 = vadd.f32 %v502_v58, %v496_v20  ;;  %v750_v51 = vperm.slane %v1156_v0, 6  ;;  %v745_v55 = vmul.f32 %v744_v49, %v520_v52  ;;  %v537_v61 = vmul.f32 %v536_v39, %v534_v38 }
  0xdb   : > { %v737_v32 = vadd.f32 %v736_v27, %v734_v36  ;;  %v748_v44 = vmul.f32 %v747_v30, %v527_v15  ;;  %v753_v19 = vperm.slane %v1156_v0, 7  ;;  %v544_v63 = vmul.f32 %v543_v50, %v541_v56 }
  0xdc   : > { %v510_v35 = vadd.f32 %v509_v23, %v503_v29  ;;  %v751_v60 = vmul.f32 %v750_v51, %v534_v38  ;;  %v549_v33 = vpop.permute.xlu2 %548 }
  0xdd   : > { %v740_v46 = vadd.f32 %v739_v26, %v737_v32  ;;  %v754_v2 = vmul.f32 %v753_v19, %v541_v56 }
  0xde   : > { %v517_v45 = vadd.f32 %v516_v53, %v510_v35 }
  0xdf   : > { %v743_v54 = vadd.f32 %v742_v43, %v740_v46 }
  0xe0   : > { %v524_v42 = vadd.f32 %v523_v41, %v517_v45 }
  0xe1   : > { %v746_v18 = vadd.f32 %v745_v55, %v743_v54 }
  0xe2   : > { %v531_v37 = vadd.f32 %v530_v48, %v524_v42 }
  0xe3   : > { %v749_v62 = vadd.f32 %v748_v44, %v746_v18 }
  0xe4   : > { %v538_v3 = vadd.f32 %v537_v61, %v531_v37 }
  0xe5   : > { %v752_v1 = vadd.f32 %v751_v60, %v749_v62 }
  0xe6   : > { %v545_v47 = vadd.f32 %v544_v63, %v538_v3 }
  0xe7   : > { %v755_v4 = vadd.f32 %v754_v2, %v752_v1 }
  0xe8   : > { %v551_v34 = vadd.f32 %v549_v33, %v545_v47 }
  0xe9   : > { %v756_v22 = vadd.f32 %v755_v4, %v549_v33 }
  0xea   : > { %552 = vst [vmem:[%s219_s13] sm:$0xf] %v551_v34 }
  0xeb   : > { %757 = vst [vmem:[%s219_s13 + $0x4] sm:$0xf] %v756_v22 }
  0xec PF: > { %s15_s18 = sadd.s32 1, %s896_s18  }
  0xed   : > { %p12_p4 = scmp.ge.s32.totalorder %s15_s18, 4  }
  0xef   :  { %14 = sbr.rel (!%p12_p4) target bundleno = 1 (0x1), region = 70 }

</bundles_post_ra>
